<compile_context>
chip_gen: v7x
topology: tpu7x:2x2x1
jax: 0.10.0
libtpu: 0.0.40
codegen_flags: <defaults>
</compile_context>

<pallas_src>
import jax
import jax.numpy as jnp
from jax.experimental import pallas as pl
from jax.experimental.pallas import tpu as pltpu


def _round_up(x, m):
    return ((x + m - 1) // m) * m


def _vmem_capacity_bytes():
    try:
        cap = int(pltpu.get_tpu_info().vmem_capacity_bytes)
        if cap > 0:
            return cap
    except Exception:
        pass
    return 64 << 20  # conservative fallback (v7x per-TC physical VMEM)


def _expand_kernel_split(x_ref, w_ref, b_ref, o_ref):
    # x_ref: (tr*W, C_in)          input pixels, channels-last
    # w_ref: (2, C_in, 2*C_out)    per-kh weight, col = kw*C_out + co   (bf16)
    # b_ref: (1, 2*C_out)          bias tiled over kw                    (f32)
    # o_ref: (tr, 2, W, 2*C_out)   output, indexed (pixel-row, kh, w, kw*C_out+co)
    tr, _, W, half = o_ref.shape
    x = x_ref[...].astype(w_ref.dtype)
    bias = b_ref[...]
    y0 = jnp.dot(x, w_ref[0], preferred_element_type=jnp.float32) + bias
    o_ref[:, 0, :, :] = y0.reshape(tr, W, half).astype(o_ref.dtype)
    y1 = jnp.dot(x, w_ref[1], preferred_element_type=jnp.float32) + bias
    o_ref[:, 1, :, :] = y1.reshape(tr, W, half).astype(o_ref.dtype)


def _expand_kernel_fused(x_ref, w_ref, b_ref, o_ref):
    # x_ref: (tr*W, C_in)
    # w_ref: (C_in, 4*C_out)       col = (kh*2 + kw)*C_out + co          (bf16)
    # b_ref: (1, 4*C_out)          bias tiled over (kh, kw)              (f32)
    # o_ref: (tr, 2, W, 2*C_out)
    tr, _, W, half = o_ref.shape
    x = x_ref[...].astype(w_ref.dtype)
    y = jnp.dot(x, w_ref[...], preferred_element_type=jnp.float32) + b_ref[...]
    # half % 128 == 0 on this path -> the kh split is a free lane-group select.
    o_ref[:, 0, :, :] = y[:, :half].reshape(tr, W, half).astype(o_ref.dtype)
    o_ref[:, 1, :, :] = y[:, half:].reshape(tr, W, half).astype(o_ref.dtype)


def _choose_row_tile(m_rows, W, c_in, n_half, in_itemsize, out_itemsize,
                     budget_bytes, min_steps=4):
    """Pixel-row tile: as big as the VMEM budget allows, but capped so the grid keeps
    several balanced steps (pipelining / megacore) and the input block stays <= 8 MiB."""
    lane_in = _round_up(c_in, 128)
    lane_out = _round_up(n_half, 128)
    # VMEM per pixel-row: double-buffered input & output blocks + live f32 temporaries.
    per_row = (2 * W * lane_in * in_itemsize
               + 2 * 2 * _round_up(W, 8) * lane_out * out_itemsize
               + 2 * W * lane_out * 4)
    tr = max(8, (budget_bytes // max(per_row, 1)) // 8 * 8)
    # HBM roofline is reached well below 8 MiB input blocks; don't go bigger.
    max_in_rows = max(8, ((8 << 20) // max(W * lane_in * in_itemsize, 1)) // 8 * 8)
    tr = min(tr, max_in_rows)
    # Keep >= min_steps grid steps so DMA/compute overlap and both v7x TCs have work.
    tr = min(tr, max(8, _round_up(pl.cdiv(m_rows, min_steps), 8)))
    if tr >= m_rows:
        return m_rows                       # single full block
    for cand in range(tr, 7, -8):           # prefer an even split (no ragged tail)
        if m_rows % cand == 0:
            return cand
    return tr                               # ragged tail; Pallas masks the partial block


def patch_expand_conv(x, weight, bias, input_resolution, *, use_bf16=True):
    """
    x:      (B, H*W, C_in)
    weight: (C_in, C_out, 2, 2)   PyTorch ConvTranspose2d weight layout (IOHW)
    bias:   (C_out,)
    returns (B, (2H)*(2W), C_out), dtype of x
    """
    if isinstance(input_resolution, int):
        input_resolution = (input_resolution, input_resolution)
    H, W = input_resolution
    B, HW, C_in = x.shape
    assert HW == H * W
    C_out = weight.shape[1]
    n_half = 2 * C_out                      # per-kh output channels (kw, co)
    m_rows = B * H                          # pixel rows (batch*height flattened)
    m_pix = m_rows * W                      # total input pixels

    fused = (n_half % 128 == 0)
    compute_dtype = jnp.bfloat16 if use_bf16 else x.dtype
    w_itemsize = jnp.dtype(compute_dtype).itemsize

    # GEMM operands (reshapes below are memory-identical / tiny).
    x2d = x.reshape(m_pix, C_in)                                   # row = (b*H + h)*W + w
    if fused:
        # w_mat[ci, (kh*2+kw)*C_out + co] = weight[ci, co, kh, kw]
        w_mat = jnp.transpose(weight, (0, 2, 3, 1)).reshape(C_in, 4 * C_out)
        w_mat = w_mat.astype(compute_dtype)
        b_mat = jnp.tile(bias, 4).reshape(1, 4 * C_out).astype(jnp.float32)
        w_spec = pl.BlockSpec((C_in, 4 * C_out), lambda i: (0, 0))
        b_spec = pl.BlockSpec((1, 4 * C_out), lambda i: (0, 0))
        kernel = _expand_kernel_fused
        w_vmem = _round_up(C_in, 8) * _round_up(4 * C_out, 128) * w_itemsize
    else:
        # w_mat[kh, ci, kw*C_out + co] = weight[ci, co, kh, kw]
        w_mat = jnp.transpose(weight, (2, 0, 3, 1)).reshape(2, C_in, n_half)
        w_mat = w_mat.astype(compute_dtype)
        b_mat = jnp.tile(bias, 2).reshape(1, n_half).astype(jnp.float32)
        w_spec = pl.BlockSpec((2, C_in, n_half), lambda i: (0, 0, 0))
        b_spec = pl.BlockSpec((1, n_half), lambda i: (0, 0))
        kernel = _expand_kernel_split
        w_vmem = 2 * _round_up(C_in, 8) * _round_up(n_half, 128) * w_itemsize

    # VMEM budgeting derived from the actual chip (v7x has only 64 MiB/TC).
    vmem_cap = _vmem_capacity_bytes()
    vmem_limit = int(min(vmem_cap // 2, 48 << 20))
    tile_budget = int(min(vmem_cap // 4, 16 << 20))
    tile_budget = max(tile_budget - 2 * w_vmem, 2 << 20)   # weight blocks double-buffered

    tr = _choose_row_tile(m_rows, W, C_in, n_half,
                          x.dtype.itemsize, x.dtype.itemsize, tile_budget)
    grid = (pl.cdiv(m_rows, tr),)

    cost = pl.CostEstimate(
        flops=2 * m_pix * C_in * 4 * C_out,
        transcendentals=0,
        bytes_accessed=(x.dtype.itemsize * m_pix * C_in
                        + w_itemsize * 4 * C_in * C_out
                        + x.dtype.itemsize * m_pix * 4 * C_out),
    )

    # Output is written directly in its final memory layout:
    #   (B, 2H, 2W, C_out) == (B*H, 2, W, 2*C_out)   (memory-identical views)
    y = pl.pallas_call(
        kernel,
        out_shape=jax.ShapeDtypeStruct((m_rows, 2, W, n_half), x.dtype),
        grid_spec=pltpu.PrefetchScalarGridSpec(
            num_scalar_prefetch=0,
            grid=grid,
            in_specs=[
                pl.BlockSpec((tr * W, C_in), lambda i: (i, 0)),
                w_spec,
                b_spec,
            ],
            out_specs=pl.BlockSpec((tr, 2, W, n_half), lambda i: (i, 0, 0, 0)),
        ),
        compiler_params=pltpu.CompilerParams(
            dimension_semantics=("parallel",),
            vmem_limit_bytes=vmem_limit,
        ),
        cost_estimate=cost,
    )(x2d, w_mat, b_mat)

    # Free (memory-identical) view back to (B, (2H)*(2W), C_out).
    return y.reshape(B, (2 * H) * (2 * W), C_out)


def _reference(x, weight, bias, H, W, compute_dtype=jnp.bfloat16):
    """Plain-JAX ConvTranspose2d(k=2, s=2) reference, same bf16-operand / f32-accum path."""
    B, _, C_in = x.shape
    C_out = weight.shape[1]
    x_nchw = jnp.transpose(x.reshape(B, H, W, C_in), (0, 3, 1, 2))
    ref = jnp.einsum("bchw,cokl->bohwkl",
                     x_nchw.astype(compute_dtype), weight.astype(compute_dtype),
                     preferred_element_type=jnp.float32)
    ref = jnp.transpose(ref, (0, 1, 2, 4, 3, 5)).reshape(B, C_out, 2 * H, 2 * W)
    ref = ref + bias[None, :, None, None]
    return jnp.transpose(ref, (0, 2, 3, 1)).reshape(B, (2 * H) * (2 * W), C_out)


def _run_case(key, B, H, W, dim, dim_scale):
    C_out = dim // dim_scale
    kx, kw_key, kb = jax.random.split(key, 3)
    x = jax.random.normal(kx, (B, H * W, dim), dtype=jnp.float32)
    weight = jax.random.normal(kw_key, (dim, C_out, 2, 2), dtype=jnp.float32) * 0.05
    bias = jax.random.normal(kb, (C_out,), dtype=jnp.float32) * 0.05

    out = jax.block_until_ready(patch_expand_conv(x, weight, bias, (H, W)))
    ref = _reference(x, weight, bias, H, W)

    assert out.shape == (B, (2 * H) * (2 * W), C_out), out.shape
    assert jnp.allclose(out, ref, atol=2e-2, rtol=2e-2), (
        float(jnp.max(jnp.abs(out - ref))))
    return out


if __name__ == "__main__":
    key = jax.random.PRNGKey(0)
    k1, k2, k3 = jax.random.split(key, 3)

    # 1) Small-channel (split-dot) path: B=2, dim=32, dim_scale=4 -> C_out=8,
    #    resolution 8x8 -> x: (2, 64, 32), output: (2, 256, 8).
    _run_case(k1, B=2, H=8, W=8, dim=32, dim_scale=4)

    # 2) Ragged grid (m_rows=10 not divisible by the 8-row tile): masked tail block.
    _run_case(k2, B=2, H=5, W=8, dim=32, dim_scale=4)

    # 3) Fused single-dot path (2*C_out = 128): dim=256, dim_scale=4 -> C_out=64.
    _run_case(k3, B=1, H=4, W=4, dim=256, dim_scale=4)

    print("KERNEL_OK")
</pallas_src>

<mosaic_0001>
module attributes {stable_mosaic.version = 11 : i64} {
  func.func @_expand_kernel_split(%arg0: i32, %arg1: memref<64x32xf32, #tpu.memory_space<vmem>>, %arg2: memref<2x32x16xbf16, #tpu.memory_space<vmem>>, %arg3: memref<1x16xf32, #tpu.memory_space<vmem>>, %arg4: memref<8x2x8x16xf32, #tpu.memory_space<vmem>>) attributes {dimension_semantics = [#tpu.dimension_semantics<parallel>], iteration_bounds = array<i64: 2>, scalar_prefetch = 0 : i64, scratch_operands = 0 : i64, tpu.core_type = #tpu.core_type<tc>, window_params = [{transform_indices = @transform_0, window_bounds = array<i64: 64, 32>}, {pipeline_mode = #tpu.pipeline_mode<synchronous>, transform_indices = @transform_1, window_bounds = array<i64: 2, 32, 16>}, {pipeline_mode = #tpu.pipeline_mode<synchronous>, transform_indices = @transform_2, window_bounds = array<i64: 1, 16>}, {transform_indices = @transform_3, window_bounds = array<i64: 8, 2, 8, 16>}]} {
    %c0 = arith.constant 0 : index
    %c0_0 = arith.constant 0 : index
    %0 = vector.load %arg1[%c0, %c0_0] : memref<64x32xf32, #tpu.memory_space<vmem>>, vector<64x32xf32>
    %1 = arith.truncf %0 : vector<64x32xf32> to vector<64x32xbf16>
    %c0_1 = arith.constant 0 : index
    %c0_2 = arith.constant 0 : index
    %2 = vector.load %arg3[%c0_1, %c0_2] : memref<1x16xf32, #tpu.memory_space<vmem>>, vector<1x16xf32>
    %c0_3 = arith.constant 0 : index
    %c0_4 = arith.constant 0 : index
    %c0_5 = arith.constant 0 : index
    %3 = vector.load %arg2[%c0_3, %c0_4, %c0_5] : memref<2x32x16xbf16, #tpu.memory_space<vmem>>, vector<1x32x16xbf16>
    %4 = vector.shape_cast %3 : vector<1x32x16xbf16> to vector<32x16xbf16>
    %cst = arith.constant dense<0.000000e+00> : vector<64x16xf32>
    %5 = tpu.matmul %1, %4, %cst {dimension_numbers = #tpu.dot_dimension_numbers<[1], [0], [0], [1], [0, 0, 1, 1], [], []>} : vector<64x32xbf16>, vector<32x16xbf16>, vector<64x16xf32> -> vector<64x16xf32>
    %6 = vector.broadcast %2 : vector<1x16xf32> to vector<64x16xf32>
    %7 = arith.addf %5, %6 : vector<64x16xf32>
    %8 = vector.shape_cast %7 : vector<64x16xf32> to vector<8x8x16xf32>
    %c0_6 = arith.constant 0 : index
    %c0_7 = arith.constant 0 : index
    %c0_8 = arith.constant 0 : index
    %c0_9 = arith.constant 0 : index
    %9 = vector.load %arg4[%c0_6, %c0_7, %c0_8, %c0_9] : memref<8x2x8x16xf32, #tpu.memory_space<vmem>>, vector<8x1x8x16xf32>
    %10 = vector.shape_cast %9 : vector<8x1x8x16xf32> to vector<8x8x16xf32>
    %11 = vector.shape_cast %8 : vector<8x8x16xf32> to vector<8x1x8x16xf32>
    tpu.vector_store %arg4[%c0_6, %c0_7, %c0_8, %c0_9], %11 {strides = array<i32>} : memref<8x2x8x16xf32, #tpu.memory_space<vmem>>, vector<8x1x8x16xf32>,
    %c1 = arith.constant 1 : index
    %c0_10 = arith.constant 0 : index
    %c0_11 = arith.constant 0 : index
    %12 = vector.load %arg2[%c1, %c0_10, %c0_11] : memref<2x32x16xbf16, #tpu.memory_space<vmem>>, vector<1x32x16xbf16>
    %13 = vector.shape_cast %12 : vector<1x32x16xbf16> to vector<32x16xbf16>
    %cst_12 = arith.constant dense<0.000000e+00> : vector<64x16xf32>
    %14 = tpu.matmul %1, %13, %cst_12 {dimension_numbers = #tpu.dot_dimension_numbers<[1], [0], [0], [1], [0, 0, 1, 1], [], []>} : vector<64x32xbf16>, vector<32x16xbf16>, vector<64x16xf32> -> vector<64x16xf32>
    %15 = vector.broadcast %2 : vector<1x16xf32> to vector<64x16xf32>
    %16 = arith.addf %14, %15 : vector<64x16xf32>
    %17 = vector.shape_cast %16 : vector<64x16xf32> to vector<8x8x16xf32>
    %c0_13 = arith.constant 0 : index
    %c1_14 = arith.constant 1 : index
    %c0_15 = arith.constant 0 : index
    %c0_16 = arith.constant 0 : index
    %18 = vector.load %arg4[%c0_13, %c1_14, %c0_15, %c0_16] : memref<8x2x8x16xf32, #tpu.memory_space<vmem>>, vector<8x1x8x16xf32>
    %19 = vector.shape_cast %18 : vector<8x1x8x16xf32> to vector<8x8x16xf32>
    %20 = vector.shape_cast %17 : vector<8x8x16xf32> to vector<8x1x8x16xf32>
    tpu.vector_store %arg4[%c0_13, %c1_14, %c0_15, %c0_16], %20 {strides = array<i32>} : memref<8x2x8x16xf32, #tpu.memory_space<vmem>>, vector<8x1x8x16xf32>,
    return
  }
  func.func @transform_0(%arg0: i32) -> (i32, i32) {
    %c0_i32 = arith.constant 0 : i32
    %c0_i32_0 = arith.constant 0 : i32
    return %arg0, %c0_i32 : i32, i32
  }
  func.func @transform_1(%arg0: i32) -> (i32, i32, i32) {
    %c0_i32 = arith.constant 0 : i32
    %c0_i32_0 = arith.constant 0 : i32
    %c0_i32_1 = arith.constant 0 : i32
    %c0_i32_2 = arith.constant 0 : i32
    return %c0_i32, %c0_i32_0, %c0_i32_1 : i32, i32, i32
  }
  func.func @transform_2(%arg0: i32) -> (i32, i32) {
    %c0_i32 = arith.constant 0 : i32
    %c0_i32_0 = arith.constant 0 : i32
    %c0_i32_1 = arith.constant 0 : i32
    return %c0_i32, %c0_i32_0 : i32, i32
  }
  func.func @transform_3(%arg0: i32) -> (i32, i32, i32, i32) {
    %c0_i32 = arith.constant 0 : i32
    %c0_i32_0 = arith.constant 0 : i32
    %c0_i32_1 = arith.constant 0 : i32
    %c0_i32_2 = arith.constant 0 : i32
    return %arg0, %c0_i32, %c0_i32_0, %c0_i32_1 : i32, i32, i32, i32
  }
}

</mosaic_0001>

<bundles_post_ra>
// kernel: tpu_custom_call.1
= control target key start
LH: loop header
LB: loop body
LE: loop exit
PB: predicated region body
PF: predicated region fallthrough
CT: control target
= control target key end

     0   :  { %8 = vsyncpa [#allocation3], 0  ;;  %s835_s0 = inlined_call_operand.vmem [shape: f32[128,32], index: 0, kind: input, shape index: {}]   ;;  %s836_s1 = inlined_call_operand.vmem [shape: bf16[2,32,16], index: 1, kind: input, shape index: {}]   ;;  %s837_s2 = inlined_call_operand.vmem [shape: f32[1,16], index: 2, kind: input, shape index: {}]   ;;  %s838_s3 = inlined_call_operand.hbm [shape: f32[16,2,8,16], index: 3, kind: output, shape index: {}]  }
   0x1   :  { %10 = vsyncpa [#allocation3 + $0x1], 0  ;;  %s671_s12 = smov 0   ;;  %s673_s13 = smov 0  }
   0x2   :  { %s675_s14 = smov 0   ;;  %s677_s15 = smov 0  }
   0x3 LB: > { %s692_s16 = sadd.s32 4294967295, %s646_s15   ;;  %s463_s17 = sadd.s32 4294967294, %s646_s15   ;;  %s646_s15 = sphi %s677_s15, %s844_s15   ;;  %s642_s14 = sphi %s675_s14, %s843_s14   ;;  %s638_s13 = sphi %s673_s13, %s842_s13   ;;  %s634_s12 = sphi %s671_s12, %s841_s12  }
   0x4   : > { %s696_s18 = sadd.s32 1, %s646_s15   ;;  %s91_s19 = sadd.s32 1, %s642_s14 }
   0x5   : > { %s88_s20 = ssub.s32 %s646_s15, %s696_s18  ;;  %p101_p0 = scmp.ne.s32.totalorder %s642_s14, %s638_s13 }
   0x6   : > { %p89_p1 = scmp.eq.s32.totalorder %s88_s20, 0  ;;  %p102_p2 = scmp.eq.s32.totalorder %s692_s16, 1 }
   0x7   : > { %p107_p3 = scmp.ne.s32.totalorder %s638_s13, %s634_s12  ;;  %p108_p4 = scmp.eq.s32.totalorder %s463_s17, 1 }
   0x8   : > { %s707_s21 = scalar_select %p89_p1, %s642_s14, %s91_s19  }
   0x9   : > { %p709_p5 = por %p102_p2, %p101_p0  ;;  %p713_p6 = por %p108_p4, %p107_p3 }
   0xa   : > { %p466_p7 = scmp.ge.s32.totalorder %s646_s15, 1  ;;  %p141_p8 = scmp.lt.s32.totalorder %s646_s15, 3 }
   0xc   : > { %p142_p9 = pnand %p466_p7, %p141_p8 }
   0xd   : > { %v580_v0 = vld [vmem:[%s836_s1] sm:$0xff] (!%p142_p9)   ;;  %s468_s26 = sshll.u32 (!%p142_p9), %s692_s16, 3  ;;  %v581_v1 = vld [vmem:[%s836_s1 + $0x10] sm:$0xff] (!%p142_p9)   ;;  %v582_v2 = vld [vmem:[%s836_s1 + $0x8] sm:$0xff] (!%p142_p9)   ;;  %vm208_vm0 = vcmask (!%p142_p9), 261120   ;;  %s162_s10 = sand.u32 (!%p142_p9), 1, %s638_s13  }
   0xe   : > { %145 = sbr.rel (%p142_p9) target bundleno = 268 (0x10c), region = 32  ;;  %p166_p10 = scmp.lt.s32.totalorder (!%p142_p9), %s468_s26, 15  ;;  %515 = vmatprep.subr.bf16.mxu0 (!%p142_p9), %v580_v0  ;;  %527 = vmatprep.subr.bf16.mxu1 (!%p142_p9), %v581_v1  ;;  %v583_v3 = vld [vmem:[%s836_s1 + $0x18] sm:$0xff] (!%p142_p9)   ;;  %v470_v16 = vld [vmem:[%s837_s2] ss:$0 sm:$0xff] (!%p142_p9)  ;;  %vm286_vm1 = vcmask (!%p142_p9), 130048  }
   0xf   : > { %516 = vmatpush3.bf16.msra.mxu0 (!%p142_p9), %v580_v0  ;;  %528 = vmatpush3.bf16.msra.mxu1 (!%p142_p9), %v581_v1  ;;  %s467_s11 = sshll.u32 (!%p142_p9), %s162_s10, 7  ;;  %s502_s24 = sshll.u32 (!%p142_p9), %s692_s16, 11 }
  0x10   : > { %517 = vmatprep.subr.bf16.mxu0 (!%p142_p9), %v582_v2  ;;  %529 = vmatprep.subr.bf16.mxu1 (!%p142_p9), %v583_v3  ;;  %s749_s20 = scalar_lea.vmem (!%p142_p9), [#allocation2], %s467_s11  ;;  %s776_s27 = scalar_lea.hbm (!%p142_p9), %s838_s3, %s502_s24 }
  0x11   : > { %s401_s25 = sshll.u32 (!%p142_p9), %s749_s20, 4  ;;  %s794_s28 = scalar_lea.sflag (!%p142_p9), [#allocation3], %s162_s10  ;;  %s778_s25 = int_to_ptr.vmem [resolvable:$true] %s401_s25 }
  0x12   : > { %s584_s29 = scalar_lea.vmem (!%p142_p9), %s778_s25, 2048  ;;  %s648_s30 = smov (!%p142_p9), [#allocation2]  }
  0x13   : > { %518 = vmatpush3.bf16.msra.mxu0 (!%p142_p9), %v582_v2  ;;  %530 = vmatpush3.bf16.msra.mxu1 (!%p142_p9), %v583_v3  ;;  %p585_p11 = scmp.ne.s32.totalorder (!%p142_p9), %s778_s25, %s584_s29  ;;  %s588_s4 = sshll.u32 (!%p142_p9), %s648_s30, 4  ;;  %s589_s4 = int_to_ptr.vmem [resolvable:$false] %s588_s4 }
  0x14   : > { %s590_s5 = scalar_lea.vmem (!%p142_p9), %s589_s4, 4096  ;;  %p591_p0 = scmp.lt.s32.totalorder (!%p142_p9), %s778_s25, %s589_s4 }
  0x15   : > { %s846_s26 = smov (!%p166_p10, %s468_s26), 15  ;;  %p586_p12 = pnand %p585_p11, %p709_p5 }
  0x16   : > { %s469_s6 = sshll.u32 %s846_s26, 3  ;;  %p592_p1 = scmp.lt.s32.totalorder %s590_s5, %s584_s29 }
  0x17   : > { %s169_s9 = scalar_lea.vmem %s835_s0, %s469_s6  ;;  %p587_p13 = pneg %p586_p12 }
  0x18   : > { %v173_v4 = vld [vmem:[%s169_s9] sm:$0xff]  ;;  %v174_v5 = vld [vmem:[%s169_s9 + $0x8] sm:$0xff]  ;;  %v175_v6 = vld [vmem:[%s169_s9 + $0x10] sm:$0xff]  ;;  %p593_p2 = por %p592_p1, %p591_p0 }
  0x19   : > { %v181_v7 = vpack.c.bf16 %v174_v5, %v173_v4  ;;  %v176_v8 = vld [vmem:[%s169_s9 + $0x18] sm:$0xff]  ;;  %v177_v9 = vld [vmem:[%s169_s9 + $0x20] sm:$0xff]  ;;  %v178_v10 = vld [vmem:[%s169_s9 + $0x28] sm:$0xff] }
  0x1a   : > { %v182_v11 = vpack.c.bf16 %v176_v8, %v175_v6  ;;  %v183_v12 = vpack.c.bf16 %v178_v10, %v177_v9  ;;  %v179_v13 = vld [vmem:[%s169_s9 + $0x30] sm:$0xff]  ;;  %v180_v14 = vld [vmem:[%s169_s9 + $0x38] sm:$0xff]  ;;  %p594_p3 = pnand %p593_p2, %p587_p13 }
  0x1b   : > { %519 = vmatprep.mubr.msk.bf16.mxu0 %vm208_vm0, %v181_v7  ;;  %531 = vmatprep.mubr.msk.bf16.mxu1 %vm208_vm0, %v181_v7  ;;  %v184_v15 = vpack.c.bf16 %v180_v14, %v179_v13 }
  0x1c   : > { %520 = vmatmul.mubr.msk.bf16.vlgmr.msra.gmra.mrb[0].mxu0 %vm208_vm0, %v182_v11  ;;  %532 = vmatmul.mubr.msk.bf16.vlgmr.msra.gmra.mrb[0].mxu1 %vm208_vm0, %v182_v11 }
  0x1d   : > { %523 = vmatprep.mubr.msk.bf16.mxu0 %vm208_vm0, %v183_v12  ;;  %535 = vmatprep.mubr.msk.bf16.mxu1 %vm208_vm0, %v183_v12 }
  0x24   : > { %524 = vmatmul.mubr.msk.bf16.gmra.mrb[4].mxu0 %vm208_vm0, %v184_v15  ;;  %536 = vmatmul.mubr.msk.bf16.gmra.mrb[4].mxu1 %vm208_vm0, %v184_v15 }
  0xef   : > { %v521_v17 = vpop.f32.mrb[0].mxu0  ;;  %v533_v18 = vpop.f32.mrb[0].mxu1 }
  0xf0   : > { %v264_v19 = vadd.f32 %v521_v17, %v470_v16  ;;  %v355_v20 = vadd.f32 %v533_v18, %v470_v16  ;;  %v255_v21 = vpop.f32.mrb[1].mxu0  ;;  %v346_v22 = vpop.f32.mrb[1].mxu1 }
  0xf1   : > { %v256_v23 = vadd.f32 %v470_v16, %v255_v21  ;;  %v347_v24 = vadd.f32 %v470_v16, %v346_v22  ;;  %v522_v25 = vpop.f32.mrb[2].mxu0  ;;  %v534_v26 = vpop.f32.mrb[2].mxu1 }
  0xf2   : > { %289 = vst.msk [vmem:[%s749_s20 + $0x20] sm:$0xff] %vm286_vm1, %v264_v19  ;;  %489 = vst.msk [vmem:[%s749_s20 + $0x28] sm:$0xff] %vm286_vm1, %v355_v20  ;;  %v267_v27 = vadd.f32 %v522_v25, %v470_v16  ;;  %v358_v28 = vadd.f32 %v534_v26, %v470_v16  ;;  %v258_v29 = vpop.f32.mrb[3].mxu0  ;;  %v349_v30 = vpop.f32.mrb[3].mxu1 }
  0xf3   : > { %287 = vst.msk [vmem:[%s749_s20] sm:$0xff] %vm286_vm1, %v256_v23  ;;  %487 = vst.msk [vmem:[%s749_s20 + $0x8] sm:$0xff] %vm286_vm1, %v347_v24  ;;  %v259_v31 = vadd.f32 %v470_v16, %v258_v29  ;;  %v350_v32 = vadd.f32 %v470_v16, %v349_v30 }
  0xf4   : > { %290 = vst.msk [vmem:[%s749_s20 + $0x30] sm:$0xff] %vm286_vm1, %v267_v27  ;;  %490 = vst.msk [vmem:[%s749_s20 + $0x38] sm:$0xff] %vm286_vm1, %v358_v28 }
  0xf5   : > { %288 = vst.msk [vmem:[%s749_s20 + $0x10] sm:$0xff] %vm286_vm1, %v259_v31  ;;  %488 = vst.msk [vmem:[%s749_s20 + $0x18] sm:$0xff] %vm286_vm1, %v350_v32 }
  0xf7   : > { %v525_v33 = vpop.f32.mrb[4].mxu0  ;;  %v537_v34 = vpop.f32.mrb[4].mxu1 }
  0xf8   : > { %v280_v35 = vadd.f32 %v525_v33, %v470_v16  ;;  %v371_v36 = vadd.f32 %v537_v34, %v470_v16  ;;  %v271_v37 = vpop.f32.mrb[5].mxu0  ;;  %v362_v38 = vpop.f32.mrb[5].mxu1 }
  0xf9   : > { %v272_v39 = vadd.f32 %v470_v16, %v271_v37  ;;  %v363_v40 = vadd.f32 %v470_v16, %v362_v38  ;;  %v526_v41 = vpop.f32.mrb[6].mxu0  ;;  %v538_v42 = vpop.f32.mrb[6].mxu1 }
  0xfa   : > { %293 = vst.msk [vmem:[%s749_s20 + $0x60] sm:$0xff] %vm286_vm1, %v280_v35  ;;  %493 = vst.msk [vmem:[%s749_s20 + $0x68] sm:$0xff] %vm286_vm1, %v371_v36  ;;  %v283_v43 = vadd.f32 %v526_v41, %v470_v16  ;;  %v374_v44 = vadd.f32 %v538_v42, %v470_v16  ;;  %v274_v45 = vpop.f32.mrb[7].mxu0  ;;  %v365_v46 = vpop.f32.mrb[7].mxu1 }
  0xfb   : > { %291 = vst.msk [vmem:[%s749_s20 + $0x40] sm:$0xff] %vm286_vm1, %v272_v39  ;;  %491 = vst.msk [vmem:[%s749_s20 + $0x48] sm:$0xff] %vm286_vm1, %v363_v40  ;;  %v275_v47 = vadd.f32 %v470_v16, %v274_v45  ;;  %v366_v48 = vadd.f32 %v470_v16, %v365_v46 }
  0xfc   : > { %294 = vst.msk [vmem:[%s749_s20 + $0x70] sm:$0xff] %vm286_vm1, %v283_v43  ;;  %494 = vst.msk [vmem:[%s749_s20 + $0x78] sm:$0xff] %vm286_vm1, %v374_v44 }
  0xfd   : > { %292 = vst.msk [vmem:[%s749_s20 + $0x50] sm:$0xff] %vm286_vm1, %v275_v47  ;;  %492 = vst.msk [vmem:[%s749_s20 + $0x58] sm:$0xff] %vm286_vm1, %v366_v48 }
  0xfe   : > { %597 = shalt.err (!%p594_p3)
}
  0xff   : > { %s598_s6 = scalar_lea.hbm %s776_s27, 2048  ;;  %s602_s9 = scalar_lea.hbm %s838_s3, 4096 }
 0x100   : > { %p599_p4 = scmp.ne.s32.totalorder %s776_s27, %s598_s6  ;;  %p603_p9 = scmp.lt.u32.totalorder %s776_s27, %s838_s3 }
 0x101   : > { %p604_p10 = scmp.lt.u32.totalorder %s602_s9, %s598_s6  ;;  %p606_p12 = scmp.lt.u32.totalorder %s598_s6, %s776_s27 }
 0x102   : > { %p600_p7 = pnand %p599_p4, %p709_p5 }
 0x103   : > { %p605_p11 = por %p604_p10, %p603_p9 }
 0x104   : > { %p601_p8 = pneg %p600_p7 }
 0x105   : > { %p607_p13 = por %p606_p12, %p605_p11 }
 0x107   : > { %p608_p0 = pnand %p607_p13, %p601_p8 }
 0x109   : > { %611 = shalt.err (!%p608_p0)
}
 0x10a   : > { %s649_s17 = smov 128   ;;  %s650_s19 = smov 8  }
 0x10b   : > { %539 = dma.vmem_to_hbm [thread:$0]  (%p709_p5), %s778_s25, 2048, %s776_s27, %s794_s28, %s649_s17, %s649_s17, %s650_s19  }
 0x10c PF: > { %p545_p1 = scmp.ge.s32.totalorder %s646_s15, 2  ;;  %s416_s20 = sand.u32 1, %s634_s12  }
 0x10d   : > { %s417_s24 = scalar_lea.sflag [#allocation3], %s416_s20 }
 0x10e   : > { %p542_p2 = pnand %p545_p1, %p713_p6 }
 0x110   : > { %629 = dma.done.wait (!%p542_p2), %s417_s24, 2048  }
 0x111   : > { %631 = vsyncadd (!%p542_p2), %s417_s24, 4294965248  ;;  %p13_p3 = scmp.ge.s32.totalorder %s696_s18, 4   ;;  %s841_s12 = smov %s638_s13 }
 0x112   : > { %s842_s13 = smov %s642_s14  ;;  %s843_s14 = smov %s707_s21 }
 0x113   : > { %s844_s15 = smov %s696_s18  ;;  %15 = sbr.rel (!%p13_p3) target bundleno = 3 (0x3), region = 69 }
 0x11a   :  { %422 = vsyncpa [#allocation3], 1 }
 0x11b   :  { %424 = vsyncpa [#allocation3 + $0x1], 1 }

</bundles_post_ra>
